<compile_context>
chip_gen: v7x
topology: tpu7x:2x2x1
jax: 0.10.0
libtpu: 0.0.40
codegen_flags: <defaults>
</compile_context>

<pallas_src>
import jax
import jax.numpy as jnp
from jax.experimental import pallas as pl
from jax.experimental.pallas import tpu as pltpu


# ----------------------------- Pallas kernel --------------------------------
def tree_gru_kernel(pslot_ref,   # SMEM [T, Bp] int32 (scalar prefetch): arena slot of parent (0 = zero row)
                    xemb_ref,    # VMEM [1, Bp, E] bf16: child embeddings for this step
                    wih_ref,     # VMEM [E, 3H] bf16 (resident; gate order r|z|n on lane axis)
                    whh_ref,     # VMEM [H, 3H] bf16 (resident)
                    bi_ref,      # VMEM [1, 3H] f32  ( b_ir+b_hr | b_iz+b_hz | b_in )
                    bh_ref,      # VMEM [1, 3H] f32  (    0      |     0     | b_hn )
                    out_ref,     # VMEM [1, Bp, H] f32: new hidden for this step
                    arena_ref):  # VMEM scratch [T+1, Bp, H] f32: slot 0 = zeros, slot t+1 = step-t output
    t = pl.program_id(0)
    Bp = out_ref.shape[1]
    H = whh_ref.shape[0]

    @pl.when(t == 0)
    def _():
        arena_ref[0] = jnp.zeros((Bp, H), jnp.float32)

    # Gather parent hidden rows from the arena (per-row dynamic slot index from SMEM).
    rows = []
    for b in range(Bp):
        slab = arena_ref[pslot_ref[t, b]]        # [Bp, H], dynamic leading-axis load
        rows.append(slab[b:b + 1, :])            # [1, H]
    h = jnp.concatenate(rows, axis=0)            # [Bp, H] f32

    x = xemb_ref[0]                              # [Bp, E] bf16

    # Two fused, lane-dense matmuls (gates concatenated on the lane axis), f32 accumulate.
    gi = jnp.dot(x, wih_ref[...], preferred_element_type=jnp.float32) + bi_ref[...]
    gh = jnp.dot(h.astype(whh_ref.dtype), whh_ref[...],
                 preferred_element_type=jnp.float32) + bh_ref[...]

    # nn.GRUCell semantics (elementwise math in f32):
    #   r = sigmoid(xW_ir + b_ir + hW_hr + b_hr)
    #   z = sigmoid(xW_iz + b_iz + hW_hz + b_hz)
    #   n = tanh  (xW_in + b_in + r * (hW_hn + b_hn))
    #   h' = (1 - z) * n + z * h
    r = jax.nn.sigmoid(gi[:, 0:H] + gh[:, 0:H])
    z = jax.nn.sigmoid(gi[:, H:2 * H] + gh[:, H:2 * H])
    n = jnp.tanh(gi[:, 2 * H:3 * H] + r * gh[:, 2 * H:3 * H])
    h_new = (1.0 - z) * n + z * h

    out_ref[0] = h_new.astype(out_ref.dtype)
    arena_ref[t + 1] = h_new.astype(jnp.float32)


def tree_gru_steps(parent_slots, child_embeds, w_ih_cat, w_hh_cat, b_i_cat, b_h_cat):
    """Run all GRU tree-decode steps in a single pallas_call.

    parent_slots: [T, Bp] int32    child_embeds: [T, Bp, E] bf16
    w_ih_cat: [E, 3H] bf16         w_hh_cat: [H, 3H] bf16
    b_i_cat / b_h_cat: [1, 3H] f32
    returns: [T, Bp, H] f32 (hidden produced at every step)
    """
    T, Bp, E = child_embeds.shape
    H = w_hh_cat.shape[0]

    grid_spec = pltpu.PrefetchScalarGridSpec(
        num_scalar_prefetch=1,
        grid=(T,),
        in_specs=[
            pl.BlockSpec((1, Bp, E), lambda t, p: (t, 0, 0)),   # per-step child embeds
            pl.BlockSpec((E, 3 * H), lambda t, p: (0, 0)),      # resident weights
            pl.BlockSpec((H, 3 * H), lambda t, p: (0, 0)),
            pl.BlockSpec((1, 3 * H), lambda t, p: (0, 0)),      # resident biases
            pl.BlockSpec((1, 3 * H), lambda t, p: (0, 0)),
        ],
        out_specs=pl.BlockSpec((1, Bp, H), lambda t, p: (t, 0, 0)),
        scratch_shapes=[pltpu.VMEM((T + 1, Bp, H), jnp.float32)],
    )
    # Grid axis carries sequential state (arena) -> "arbitrary". If multiple independent
    # trees/batches were added as a leading grid axis, mark that one "parallel" (v7x 2xTC).
    return pl.pallas_call(
        tree_gru_kernel,
        out_shape=jax.ShapeDtypeStruct((T, Bp, H), jnp.float32),
        grid_spec=grid_spec,
        compiler_params=pltpu.CompilerParams(dimension_semantics=("arbitrary",)),
    )(parent_slots, child_embeds, w_ih_cat, w_hh_cat, b_i_cat, b_h_cat)


# ----------------------------- TreeGRU module -------------------------------
class TreeGRUPallas:
    def __init__(self, hidden_size, tree_embed_dim, voc, key):
        self.hidden_size = hidden_size
        self.input_size = tree_embed_dim
        self.voc = voc
        vocab_size = len(voc)
        H, E = hidden_size, tree_embed_dim

        k = 1.0 / jnp.sqrt(jnp.float32(H))
        keys = jax.random.split(key, 5)
        # Embedding table [V, E] (f32 master copy).
        self.embedding = jax.random.normal(keys[0], (vocab_size, E), dtype=jnp.float32) * 0.1

        # nn.GRUCell-style params: weight_ih [3H, E], weight_hh [3H, H], biases [3H]
        # (gate order r, z, n). Stored pre-transposed + gate-concatenated on the lane axis.
        w_ih = jax.random.uniform(keys[1], (3 * H, E), minval=-k, maxval=k, dtype=jnp.float32)
        w_hh = jax.random.uniform(keys[2], (3 * H, H), minval=-k, maxval=k, dtype=jnp.float32)
        b_ih = jax.random.uniform(keys[3], (3 * H,), minval=-k, maxval=k, dtype=jnp.float32)
        b_hh = jax.random.uniform(keys[4], (3 * H,), minval=-k, maxval=k, dtype=jnp.float32)

        self.w_ih_cat = jnp.asarray(w_ih.T, dtype=jnp.bfloat16)   # [E, 3H]
        self.w_hh_cat = jnp.asarray(w_hh.T, dtype=jnp.bfloat16)   # [H, 3H]
        # Pre-add r/z biases; keep b_in and b_hn separate (b_hn must stay inside r*(...)).
        b_i = jnp.concatenate([b_ih[0:2 * H] + b_hh[0:2 * H], b_ih[2 * H:3 * H]])
        b_h = jnp.concatenate([jnp.zeros((2 * H,), jnp.float32), b_hh[2 * H:3 * H]])
        self.b_i_cat = b_i.reshape(1, 3 * H)
        self.b_h_cat = b_h.reshape(1, 3 * H)

    def embed(self, indices):
        # glue: embedding lookup (jnp gather), cast to bf16 for the MXU
        return jnp.take(self.embedding, jnp.asarray(indices, dtype=jnp.int32),
                        axis=0).astype(jnp.bfloat16)

    @staticmethod
    def all_stacks_empty(tree_stacks):
        return sum(len(stk) for stk in tree_stacks) == 0

    # ------------------------------------------------------------------
    # TODO(synk): the tree traversal is data-dependent host control flow (Python stacks +
    # string vocab lookups). It does not depend on hidden VALUES, so it is precomputed here
    # into a device schedule; only the GRU math runs in the Pallas kernel.
    def _build_schedule(self, batch_size, tgt_trees):
        tree_stacks = [[['ROOT', 0]] for _ in range(batch_size)]
        # step 0 = root GRU step: child = ROOT, parent = zero hidden (arena slot 0)
        child_ids = [[self.voc['ROOT']] * batch_size]
        parent_slots = [[0] * batch_size]
        # embedding stacks hold arena slots (step_index + 1) of produced hidden states
        embedding_stacks = [[1] for _ in range(batch_size)]
        leaf_slots = [[] for _ in range(batch_size)]
        step = 0
        while not self.all_stacks_empty(tree_stacks):
            step += 1
            child_row = []
            parent_row = []
            for i, stk in enumerate(tree_stacks):
                cur_tree = tgt_trees[i]
                cur_node, next_child = None, None
                if len(stk) > 0:
                    cur_node, next_child = stk[-1]
                while len(stk) > 0 and next_child >= len(cur_tree[cur_node]):
                    if next_child == 0:
                        leaf_slots[i].append(embedding_stacks[i][-1])
                    stk.pop()
                    embedding_stacks[i].pop()
                    if len(stk) > 0:
                        cur_node, next_child = stk[-1]
                if len(stk) > 0:
                    cur_node, next_child = stk[-1]
                    parent_row.append(embedding_stacks[i][-1])
                    child_row.append(
                        self.voc[cur_tree[cur_node][next_child].rsplit('-', maxsplit=1)[0]])
                    stk[-1][1] += 1
                    stk.append([cur_tree[cur_node][next_child], 0])
                else:
                    parent_row.append(0)                       # null (zero) parent
                    child_row.append(self.voc['<unk>'])
            child_ids.append(child_row)
            parent_slots.append(parent_row)
            for i in range(batch_size):
                if len(embedding_stacks[i]) > 0:
                    embedding_stacks[i].append(step + 1)       # slot of this step's output
        leaf_steps = [[s - 1 for s in slots] for slots in leaf_slots]
        return child_ids, parent_slots, leaf_steps

    def forward(self, batch_size, tgt_trees):
        child_ids, parent_slots, leaf_steps = self._build_schedule(batch_size, tgt_trees)
        T = len(child_ids)

        # Pad batch to a multiple of 8 sublanes; padded rows use zero-parent + <unk> child.
        Bp = max(8, ((batch_size + 7) // 8) * 8)
        pad = Bp - batch_size
        child_ids_p = [row + [self.voc['<unk>']] * pad for row in child_ids]
        parent_slots_p = [row + [0] * pad for row in parent_slots]

        child_ids_arr = jnp.asarray(child_ids_p, dtype=jnp.int32)        # [T, Bp]
        parent_slots_arr = jnp.asarray(parent_slots_p, dtype=jnp.int32)  # [T, Bp]
        child_embeds = self.embed(child_ids_arr)                         # [T, Bp, E] bf16

        outputs = tree_gru_steps(parent_slots_arr, child_embeds,
                                 self.w_ih_cat, self.w_hh_cat,
                                 self.b_i_cat, self.b_h_cat)             # [T, Bp, H] f32
        outputs = jax.block_until_ready(outputs)

        leaf_embedding_list = [[outputs[t, i] for t in leaf_steps[i]]
                               for i in range(batch_size)]
        return leaf_embedding_list


# --------------------------------- main --------------------------------------
if __name__ == "__main__":
    batch_size = 2
    hidden_size = 32
    tree_embed_dim = 16

    voc = {'ROOT': 0, '<unk>': 1, 'S': 2, 'NP': 3, 'VP': 4, 'N': 5, 'V': 6, 'D': 7}

    tgt_trees = [
        {
            'ROOT': ['S-1'],
            'S-1': ['NP-1', 'VP-1'],
            'NP-1': ['D-1', 'N-1'],
            'D-1': [], 'N-1': [],
            'VP-1': ['V-1', 'NP-2'],
            'V-1': [],
            'NP-2': ['N-2'],
            'N-2': [],
        },
        {
            'ROOT': ['NP-1'],
            'NP-1': ['D-1', 'N-1'],
            'D-1': [], 'N-1': [],
        },
    ]

    key = jax.random.PRNGKey(0)
    model = TreeGRUPallas(hidden_size, tree_embed_dim, voc, key)

    leaf_embedding_list = model.forward(batch_size, tgt_trees)

    # Block on every produced leaf embedding.
    flat = [e for per_batch in leaf_embedding_list for e in per_batch]
    result = jax.block_until_ready(jnp.stack(flat))
    assert result.shape[-1] == hidden_size
    assert len(leaf_embedding_list[0]) == 4 and len(leaf_embedding_list[1]) == 2
    print("KERNEL_OK")
</pallas_src>

<mosaic_0001>
module attributes {stable_mosaic.version = 11 : i64} {
  func.func @tree_gru_kernel(%arg0: i32, %arg1: memref<10x8xi32, #tpu.memory_space<smem>>, %arg2: memref<1x8x16xbf16, #tpu.memory_space<vmem>>, %arg3: memref<16x96xbf16, #tpu.memory_space<vmem>>, %arg4: memref<32x96xbf16, #tpu.memory_space<vmem>>, %arg5: memref<1x96xf32, #tpu.memory_space<vmem>>, %arg6: memref<1x96xf32, #tpu.memory_space<vmem>>, %arg7: memref<1x8x32xf32, #tpu.memory_space<vmem>>, %arg8: memref<11x8x32xf32, #tpu.memory_space<vmem>>) attributes {dimension_semantics = [#tpu.dimension_semantics<arbitrary>], iteration_bounds = array<i64: 10>, scalar_prefetch = 1 : i64, scratch_operands = 1 : i64, tpu.core_type = #tpu.core_type<tc>, window_params = [{transform_indices = @transform_0, window_bounds = array<i64: 1, 8, 16>}, {pipeline_mode = #tpu.pipeline_mode<synchronous>, transform_indices = @transform_1, window_bounds = array<i64: 16, 96>}, {pipeline_mode = #tpu.pipeline_mode<synchronous>, transform_indices = @transform_2, window_bounds = array<i64: 32, 96>}, {pipeline_mode = #tpu.pipeline_mode<synchronous>, transform_indices = @transform_3, window_bounds = array<i64: 1, 96>}, {pipeline_mode = #tpu.pipeline_mode<synchronous>, transform_indices = @transform_4, window_bounds = array<i64: 1, 96>}, {transform_indices = @transform_5, window_bounds = array<i64: 1, 8, 32>}]} {
    %c0_i32 = arith.constant 0 : i32
    %0 = arith.cmpi eq, %arg0, %c0_i32 : i32
    %1 = arith.extui %0 : i1 to i32
    %c0_i32_0 = arith.constant 0 : i32
    %2 = arith.cmpi ne, %1, %c0_i32_0 : i32
    scf.if %2 {
      %cst_37 = arith.constant 0.000000e+00 : f32
      %99 = vector.broadcast %cst_37 : f32 to vector<8x32xf32>
      %c0_38 = arith.constant 0 : index
      %c0_39 = arith.constant 0 : index
      %c0_40 = arith.constant 0 : index
      %100 = vector.load %arg8[%c0_38, %c0_39, %c0_40] : memref<11x8x32xf32, #tpu.memory_space<vmem>>, vector<1x8x32xf32>
      %101 = vector.shape_cast %100 : vector<1x8x32xf32> to vector<8x32xf32>
      %102 = vector.shape_cast %99 : vector<8x32xf32> to vector<1x8x32xf32>
      tpu.vector_store %arg8[%c0_38, %c0_39, %c0_40], %102 {strides = array<i32>} : memref<11x8x32xf32, #tpu.memory_space<vmem>>, vector<1x8x32xf32>,
    } else {
    }
    %3 = arith.index_cast %arg0 : i32 to index
    %c0 = arith.constant 0 : index
    %4 = memref.load %arg1[%3, %c0] : memref<10x8xi32, #tpu.memory_space<smem>>
    %5 = arith.index_cast %4 : i32 to index
    %c0_1 = arith.constant 0 : index
    %c0_2 = arith.constant 0 : index
    %6 = vector.load %arg8[%5, %c0_1, %c0_2] : memref<11x8x32xf32, #tpu.memory_space<vmem>>, vector<1x8x32xf32>
    %7 = vector.shape_cast %6 : vector<1x8x32xf32> to vector<8x32xf32>
    %8 = vector.extract_strided_slice %7 {offsets = [0, 0], sizes = [1, 32], strides = [1, 1]} : vector<8x32xf32> to vector<1x32xf32>
    %9 = arith.index_cast %arg0 : i32 to index
    %c1 = arith.constant 1 : index
    %10 = memref.load %arg1[%9, %c1] : memref<10x8xi32, #tpu.memory_space<smem>>
    %11 = arith.index_cast %10 : i32 to index
    %c0_3 = arith.constant 0 : index
    %c0_4 = arith.constant 0 : index
    %12 = vector.load %arg8[%11, %c0_3, %c0_4] : memref<11x8x32xf32, #tpu.memory_space<vmem>>, vector<1x8x32xf32>
    %13 = vector.shape_cast %12 : vector<1x8x32xf32> to vector<8x32xf32>
    %14 = vector.extract_strided_slice %13 {offsets = [1, 0], sizes = [1, 32], strides = [1, 1]} : vector<8x32xf32> to vector<1x32xf32>
    %15 = arith.index_cast %arg0 : i32 to index
    %c2 = arith.constant 2 : index
    %16 = memref.load %arg1[%15, %c2] : memref<10x8xi32, #tpu.memory_space<smem>>
    %17 = arith.index_cast %16 : i32 to index
    %c0_5 = arith.constant 0 : index
    %c0_6 = arith.constant 0 : index
    %18 = vector.load %arg8[%17, %c0_5, %c0_6] : memref<11x8x32xf32, #tpu.memory_space<vmem>>, vector<1x8x32xf32>
    %19 = vector.shape_cast %18 : vector<1x8x32xf32> to vector<8x32xf32>
    %20 = vector.extract_strided_slice %19 {offsets = [2, 0], sizes = [1, 32], strides = [1, 1]} : vector<8x32xf32> to vector<1x32xf32>
    %21 = arith.index_cast %arg0 : i32 to index
    %c3 = arith.constant 3 : index
    %22 = memref.load %arg1[%21, %c3] : memref<10x8xi32, #tpu.memory_space<smem>>
    %23 = arith.index_cast %22 : i32 to index
    %c0_7 = arith.constant 0 : index
    %c0_8 = arith.constant 0 : index
    %24 = vector.load %arg8[%23, %c0_7, %c0_8] : memref<11x8x32xf32, #tpu.memory_space<vmem>>, vector<1x8x32xf32>
    %25 = vector.shape_cast %24 : vector<1x8x32xf32> to vector<8x32xf32>
    %26 = vector.extract_strided_slice %25 {offsets = [3, 0], sizes = [1, 32], strides = [1, 1]} : vector<8x32xf32> to vector<1x32xf32>
    %27 = arith.index_cast %arg0 : i32 to index
    %c4 = arith.constant 4 : index
    %28 = memref.load %arg1[%27, %c4] : memref<10x8xi32, #tpu.memory_space<smem>>
    %29 = arith.index_cast %28 : i32 to index
    %c0_9 = arith.constant 0 : index
    %c0_10 = arith.constant 0 : index
    %30 = vector.load %arg8[%29, %c0_9, %c0_10] : memref<11x8x32xf32, #tpu.memory_space<vmem>>, vector<1x8x32xf32>
    %31 = vector.shape_cast %30 : vector<1x8x32xf32> to vector<8x32xf32>
    %32 = vector.extract_strided_slice %31 {offsets = [4, 0], sizes = [1, 32], strides = [1, 1]} : vector<8x32xf32> to vector<1x32xf32>
    %33 = arith.index_cast %arg0 : i32 to index
    %c5 = arith.constant 5 : index
    %34 = memref.load %arg1[%33, %c5] : memref<10x8xi32, #tpu.memory_space<smem>>
    %35 = arith.index_cast %34 : i32 to index
    %c0_11 = arith.constant 0 : index
    %c0_12 = arith.constant 0 : index
    %36 = vector.load %arg8[%35, %c0_11, %c0_12] : memref<11x8x32xf32, #tpu.memory_space<vmem>>, vector<1x8x32xf32>
    %37 = vector.shape_cast %36 : vector<1x8x32xf32> to vector<8x32xf32>
    %38 = vector.extract_strided_slice %37 {offsets = [5, 0], sizes = [1, 32], strides = [1, 1]} : vector<8x32xf32> to vector<1x32xf32>
    %39 = arith.index_cast %arg0 : i32 to index
    %c6 = arith.constant 6 : index
    %40 = memref.load %arg1[%39, %c6] : memref<10x8xi32, #tpu.memory_space<smem>>
    %41 = arith.index_cast %40 : i32 to index
    %c0_13 = arith.constant 0 : index
    %c0_14 = arith.constant 0 : index
    %42 = vector.load %arg8[%41, %c0_13, %c0_14] : memref<11x8x32xf32, #tpu.memory_space<vmem>>, vector<1x8x32xf32>
    %43 = vector.shape_cast %42 : vector<1x8x32xf32> to vector<8x32xf32>
    %44 = vector.extract_strided_slice %43 {offsets = [6, 0], sizes = [1, 32], strides = [1, 1]} : vector<8x32xf32> to vector<1x32xf32>
    %45 = arith.index_cast %arg0 : i32 to index
    %c7 = arith.constant 7 : index
    %46 = memref.load %arg1[%45, %c7] : memref<10x8xi32, #tpu.memory_space<smem>>
    %47 = arith.index_cast %46 : i32 to index
    %c0_15 = arith.constant 0 : index
    %c0_16 = arith.constant 0 : index
    %48 = vector.load %arg8[%47, %c0_15, %c0_16] : memref<11x8x32xf32, #tpu.memory_space<vmem>>, vector<1x8x32xf32>
    %49 = vector.shape_cast %48 : vector<1x8x32xf32> to vector<8x32xf32>
    %50 = vector.extract_strided_slice %49 {offsets = [7, 0], sizes = [1, 32], strides = [1, 1]} : vector<8x32xf32> to vector<1x32xf32>
    %51 = tpu.concatenate %8, %14, %20, %26, %32, %38, %44, %50 in 0 : vector<1x32xf32>, vector<1x32xf32>, vector<1x32xf32>, vector<1x32xf32>, vector<1x32xf32>, vector<1x32xf32>, vector<1x32xf32>, vector<1x32xf32> -> vector<8x32xf32>
    %c0_17 = arith.constant 0 : index
    %c0_18 = arith.constant 0 : index
    %c0_19 = arith.constant 0 : index
    %52 = vector.load %arg2[%c0_17, %c0_18, %c0_19] : memref<1x8x16xbf16, #tpu.memory_space<vmem>>, vector<1x8x16xbf16>
    %53 = vector.shape_cast %52 : vector<1x8x16xbf16> to vector<8x16xbf16>
    %c0_20 = arith.constant 0 : index
    %c0_21 = arith.constant 0 : index
    %54 = vector.load %arg3[%c0_20, %c0_21] : memref<16x96xbf16, #tpu.memory_space<vmem>>, vector<16x96xbf16>
    %cst = arith.constant dense<0.000000e+00> : vector<8x96xf32>
    %55 = tpu.matmul %53, %54, %cst {dimension_numbers = #tpu.dot_dimension_numbers<[1], [0], [0], [1], [0, 0, 1, 1], [], []>} : vector<8x16xbf16>, vector<16x96xbf16>, vector<8x96xf32> -> vector<8x96xf32>
    %c0_22 = arith.constant 0 : index
    %c0_23 = arith.constant 0 : index
    %56 = vector.load %arg5[%c0_22, %c0_23] : memref<1x96xf32, #tpu.memory_space<vmem>>, vector<1x96xf32>
    %57 = vector.broadcast %56 : vector<1x96xf32> to vector<8x96xf32>
    %58 = arith.addf %55, %57 : vector<8x96xf32>
    %59 = arith.truncf %51 : vector<8x32xf32> to vector<8x32xbf16>
    %c0_24 = arith.constant 0 : index
    %c0_25 = arith.constant 0 : index
    %60 = vector.load %arg4[%c0_24, %c0_25] : memref<32x96xbf16, #tpu.memory_space<vmem>>, vector<32x96xbf16>
    %cst_26 = arith.constant dense<0.000000e+00> : vector<8x96xf32>
    %61 = tpu.matmul %59, %60, %cst_26 {dimension_numbers = #tpu.dot_dimension_numbers<[1], [0], [0], [1], [0, 0, 1, 1], [], []>} : vector<8x32xbf16>, vector<32x96xbf16>, vector<8x96xf32> -> vector<8x96xf32>
    %c0_27 = arith.constant 0 : index
    %c0_28 = arith.constant 0 : index
    %62 = vector.load %arg6[%c0_27, %c0_28] : memref<1x96xf32, #tpu.memory_space<vmem>>, vector<1x96xf32>
    %63 = vector.broadcast %62 : vector<1x96xf32> to vector<8x96xf32>
    %64 = arith.addf %61, %63 : vector<8x96xf32>
    %65 = vector.extract_strided_slice %58 {offsets = [0, 0], sizes = [8, 32], strides = [1, 1]} : vector<8x96xf32> to vector<8x32xf32>
    %66 = vector.extract_strided_slice %64 {offsets = [0, 0], sizes = [8, 32], strides = [1, 1]} : vector<8x96xf32> to vector<8x32xf32>
    %67 = arith.addf %65, %66 : vector<8x32xf32>
    %68 = arith.negf %67 : vector<8x32xf32>
    %69 = math.exp %68 : vector<8x32xf32>
    %cst_29 = arith.constant 1.000000e+00 : f32
    %70 = vector.broadcast %cst_29 : f32 to vector<8x32xf32>
    %71 = arith.addf %70, %69 : vector<8x32xf32>
    %72 = arith.divf %70, %71 : vector<8x32xf32>
    %73 = vector.extract_strided_slice %58 {offsets = [0, 32], sizes = [8, 32], strides = [1, 1]} : vector<8x96xf32> to vector<8x32xf32>
    %74 = vector.extract_strided_slice %64 {offsets = [0, 32], sizes = [8, 32], strides = [1, 1]} : vector<8x96xf32> to vector<8x32xf32>
    %75 = arith.addf %73, %74 : vector<8x32xf32>
    %76 = arith.negf %75 : vector<8x32xf32>
    %77 = math.exp %76 : vector<8x32xf32>
    %cst_30 = arith.constant 1.000000e+00 : f32
    %78 = vector.broadcast %cst_30 : f32 to vector<8x32xf32>
    %79 = arith.addf %78, %77 : vector<8x32xf32>
    %80 = arith.divf %78, %79 : vector<8x32xf32>
    %81 = vector.extract_strided_slice %58 {offsets = [0, 64], sizes = [8, 32], strides = [1, 1]} : vector<8x96xf32> to vector<8x32xf32>
    %82 = vector.extract_strided_slice %64 {offsets = [0, 64], sizes = [8, 32], strides = [1, 1]} : vector<8x96xf32> to vector<8x32xf32>
    %83 = arith.mulf %72, %82 : vector<8x32xf32>
    %84 = arith.addf %81, %83 : vector<8x32xf32>
    %85 = math.tanh %84 : vector<8x32xf32>
    %cst_31 = arith.constant 1.000000e+00 : f32
    %86 = vector.broadcast %cst_31 : f32 to vector<8x32xf32>
    %87 = arith.subf %86, %80 : vector<8x32xf32>
    %88 = arith.mulf %87, %85 : vector<8x32xf32>
    %89 = arith.mulf %80, %51 : vector<8x32xf32>
    %90 = arith.addf %88, %89 : vector<8x32xf32>
    %c0_32 = arith.constant 0 : index
    %c0_33 = arith.constant 0 : index
    %c0_34 = arith.constant 0 : index
    %91 = vector.load %arg7[%c0_32, %c0_33, %c0_34] : memref<1x8x32xf32, #tpu.memory_space<vmem>>, vector<1x8x32xf32>
    %92 = vector.shape_cast %91 : vector<1x8x32xf32> to vector<8x32xf32>
    %93 = vector.shape_cast %90 : vector<8x32xf32> to vector<1x8x32xf32>
    tpu.vector_store %arg7[%c0_32, %c0_33, %c0_34], %93 {strides = array<i32>} : memref<1x8x32xf32, #tpu.memory_space<vmem>>, vector<1x8x32xf32>,
    %c1_i32 = arith.constant 1 : i32
    %94 = arith.addi %arg0, %c1_i32 : i32
    %95 = arith.index_cast %94 : i32 to index
    %c0_35 = arith.constant 0 : index
    %c0_36 = arith.constant 0 : index
    %96 = vector.load %arg8[%95, %c0_35, %c0_36] : memref<11x8x32xf32, #tpu.memory_space<vmem>>, vector<1x8x32xf32>
    %97 = vector.shape_cast %96 : vector<1x8x32xf32> to vector<8x32xf32>
    %98 = vector.shape_cast %90 : vector<8x32xf32> to vector<1x8x32xf32>
    tpu.vector_store %arg8[%95, %c0_35, %c0_36], %98 {strides = array<i32>} : memref<11x8x32xf32, #tpu.memory_space<vmem>>, vector<1x8x32xf32>,
    return
  }
  func.func @transform_0(%arg0: i32, %arg1: memref<10x8xi32, #tpu.memory_space<smem>>) -> (i32, i32, i32) {
    %c0_i32 = arith.constant 0 : i32
    %c0_i32_0 = arith.constant 0 : i32
    %c0_i32_1 = arith.constant 0 : i32
    return %arg0, %c0_i32, %c0_i32_0 : i32, i32, i32
  }
  func.func @transform_1(%arg0: i32, %arg1: memref<10x8xi32, #tpu.memory_space<smem>>) -> (i32, i32) {
    %c0_i32 = arith.constant 0 : i32
    %c0_i32_0 = arith.constant 0 : i32
    %c0_i32_1 = arith.constant 0 : i32
    return %c0_i32, %c0_i32_0 : i32, i32
  }
  func.func @transform_2(%arg0: i32, %arg1: memref<10x8xi32, #tpu.memory_space<smem>>) -> (i32, i32) {
    %c0_i32 = arith.constant 0 : i32
    %c0_i32_0 = arith.constant 0 : i32
    %c0_i32_1 = arith.constant 0 : i32
    return %c0_i32, %c0_i32_0 : i32, i32
  }
  func.func @transform_3(%arg0: i32, %arg1: memref<10x8xi32, #tpu.memory_space<smem>>) -> (i32, i32) {
    %c0_i32 = arith.constant 0 : i32
    %c0_i32_0 = arith.constant 0 : i32
    %c0_i32_1 = arith.constant 0 : i32
    return %c0_i32, %c0_i32_0 : i32, i32
  }
  func.func @transform_4(%arg0: i32, %arg1: memref<10x8xi32, #tpu.memory_space<smem>>) -> (i32, i32) {
    %c0_i32 = arith.constant 0 : i32
    %c0_i32_0 = arith.constant 0 : i32
    %c0_i32_1 = arith.constant 0 : i32
    return %c0_i32, %c0_i32_0 : i32, i32
  }
  func.func @transform_5(%arg0: i32, %arg1: memref<10x8xi32, #tpu.memory_space<smem>>) -> (i32, i32, i32) {
    %c0_i32 = arith.constant 0 : i32
    %c0_i32_0 = arith.constant 0 : i32
    %c0_i32_1 = arith.constant 0 : i32
    return %arg0, %c0_i32, %c0_i32_0 : i32, i32, i32
  }
}

</mosaic_0001>

<bundles_post_ra>
// kernel: tpu_custom_call.1
= control target key start
LH: loop header
LB: loop body
LE: loop exit
PB: predicated region body
PF: predicated region fallthrough
CT: control target
= control target key end

     0   :  { %s1048_s0 = inlined_call_operand.vmem [shape: s32[10,8], index: 0, kind: input, shape index: {}]   ;;  %s1049_s1 = inlined_call_operand.hbm [shape: bf16[10,8,16], index: 1, kind: input, shape index: {}]   ;;  %s1050_s2 = inlined_call_operand.vmem [shape: bf16[16,96], index: 2, kind: input, shape index: {}]   ;;  %s1051_s3 = inlined_call_operand.vmem [shape: bf16[32,96], index: 3, kind: input, shape index: {}]   ;;  %s1052_s4 = inlined_call_operand.vmem [shape: f32[1,96], index: 4, kind: input, shape index: {}]   ;;  %s1053_s5 = inlined_call_operand.vmem [shape: f32[1,96], index: 5, kind: input, shape index: {}]   ;;  %s1054_s6 = inlined_call_operand.hbm [shape: f32[10,8,32], index: 6, kind: output, shape index: {}]  }
   0x1   :  { %1056 = sst [smem:[#allocation13_spill]] %s1049_s1  ;;  %s11_s23 = sshll.u32 %s1048_s0, 4  ;;  %s12_s23 = int_to_ptr.vmem [resolvable:$true] %s11_s23 }
   0x2   :  { %1057 = sst [smem:[#allocation14_spill]] %s1050_s2  ;;  %s691_s24 = scalar_lea.vmem %s12_s23, 256 }
   0x3   :  { %1058 = sst [smem:[#allocation15_spill]] %s1051_s3  ;;  %p692_p0 = scmp.ne.s32.totalorder %s12_s23, %s691_s24 }
   0x4   :  { %p696_p1 = scmp.lt.s32.totalorder %s12_s23, %s12_s23  ;;  %p697_p2 = scmp.lt.s32.totalorder %s691_s24, %s691_s24 }
   0x6   :  { %p698_p3 = por %p697_p2, %p696_p1 }
   0x8   :  { %p699_p4 = pnand %p698_p3, %p692_p0 }
   0xa   :  { %702 = shalt.err (!%p699_p4)  }
   0xb   :  { %s803_s25 = smov [#allocation4]  }
   0xc   :  { %14 = dma.vmem_to_smem %s12_s23, 256, %s803_s25, [#allocation3] }
   0xd   :  { %777 = dma.done.wait [#allocation3], 256 }
   0xe   :  { %778 = vsyncadd [#allocation3], 4294967040 }
   0xf   :  { %16 = sfence }
  0x10   :  { %17 = vsyncpa [#allocation6], 0 }
  0x11   :  { %19 = vsyncpa [#allocation6 + $0x1], 0 }
  0x12   :  { %20 = vsyncpa [#allocation7], 0 }
  0x13   :  { %22 = vsyncpa [#allocation7 + $0x1], 0  ;;  %s850_s26 = smov 0   ;;  %s852_s0 = smov 0  }
  0x14   :  { %s854_s27 = smov 0   ;;  %s856_s28 = smov 0  }
  0x15 LB: > { %s871_s29 = sadd.s32 4294967295, %s801_s28   ;;  %s578_s30 = sadd.s32 4294967294, %s801_s28   ;;  %s801_s28 = sphi %s856_s28, %s1076_s28   ;;  %s797_s27 = sphi %s854_s27, %s1075_s27   ;;  %s793_s0 = sphi %s852_s0, %s1074_s0   ;;  %s789_s26 = sphi %s850_s26, %s1073_s26  }
  0x16   : > { %s875_s7 = sadd.s32 1, %s801_s28   ;;  %s35_s8 = sadd.s32 1, %s797_s27 }
  0x17   : > { %s32_s9 = ssub.s32 %s801_s28, %s875_s7  ;;  %p42_p5 = scmp.ne.s32.totalorder %s797_s27, %s793_s0 }
  0x18   : > { %p33_p6 = scmp.eq.s32.totalorder %s32_s9, 0  ;;  %p43_p7 = scmp.eq.s32.totalorder %s801_s28, 0 }
  0x19   : > { %p48_p8 = scmp.ne.s32.totalorder %s793_s0, %s789_s26  ;;  %p49_p9 = scmp.eq.s32.totalorder %s871_s29, 0 }
  0x1a   : > { %s887_s10 = scalar_select %p33_p6, %s797_s27, %s35_s8  }
  0x1b   : > { %p889_p10 = por %p43_p7, %p42_p5  ;;  %p893_p11 = por %p49_p9, %p48_p8 }
  0x1c   : > { %1059 = sst [smem:[#allocation12_spill]] %s887_s10  ;;  %p156_p12 = scmp.eq.s32.totalorder %s871_s29, 9 }
  0x1d   : > { %p162_p13 = scmp.eq.s32.totalorder %s578_s30, 9  ;;  %p641_p0 = scmp.lt.s32.totalorder %s801_s28, 10 }
  0x1e   : > { %p899_p1 = por %p156_p12, %p42_p5  ;;  %s194_s15 = sand.u32 1, %s797_s27  }
  0x1f   : > { %p903_p2 = por %p162_p13, %p48_p8  ;;  %s582_s16 = sshll.u32 %s801_s28, 6 }
  0x20   : > { %s1062_s13 = scalar_select %p899_p1, 1, 0 }
  0x21   : > { %s1063_s14 = scalar_select %p903_p2, 1, 0 }
  0x22   : > { %s581_s17 = sshll.u32 %s194_s15, 2  ;;  %s1064_s1 = sld [smem:[#allocation13_spill]] }
  0x23   : > { %s198_s21 = scalar_lea.vmem [#allocation5], %s581_s17  ;;  %p916_p3 = pnand %p641_p0, %p889_p10 }
  0x24   : > { %s205_s22 = sshll.u32 %s198_s21, 4  ;;  %s195_s24 = scalar_lea.sflag [#allocation6], %s194_s15  ;;  %s920_s22 = int_to_ptr.vmem [resolvable:$true] %s205_s22 }
  0x25   : > { %p705_p7 = pneg %p916_p3 }
  0x28   : > { %s912_s20 = scalar_lea.hbm %s1064_s1, %s582_s16  ;;  %s708_s9 = scalar_lea.hbm %s1064_s1, 640 }
  0x29   : > { %s703_s25 = scalar_lea.hbm %s912_s20, 64  ;;  %p709_p10 = scmp.lt.u32.totalorder %s912_s20, %s1064_s1 }
  0x2a   : > { %p704_p6 = scmp.ne.s32.totalorder %s912_s20, %s703_s25  ;;  %p710_p12 = scmp.lt.u32.totalorder %s708_s9, %s703_s25 }
  0x2b   : > { %p712_p0 = scmp.lt.u32.totalorder %s703_s25, %s912_s20 }
  0x2c   : > { %p706_p8 = pnand %p705_p7, %p704_p6  ;;  %p711_p13 = por %p710_p12, %p709_p10 }
  0x2e   : > { %p707_p9 = pneg %p706_p8  ;;  %p713_p4 = por %p712_p0, %p711_p13 }
  0x30   : > { %p714_p5 = pnand %p713_p4, %p707_p9 }
  0x32   : > { %717 = shalt.err (!%p714_p5)
}
  0x33   : > { %s718_s15 = scalar_lea.vmem %s920_s22, 64  ;;  %s804_s17 = smov [#allocation5]  }
  0x34   : > { %p719_p6 = scmp.ne.s32.totalorder %s920_s22, %s718_s15  ;;  %s723_s18 = sshll.u32 %s804_s17, 4  ;;  %s724_s18 = int_to_ptr.vmem [resolvable:$false] %s723_s18 }
  0x35   : > { %s725_s19 = scalar_lea.vmem %s724_s18, 128  ;;  %p726_p1 = scmp.lt.s32.totalorder %s920_s22, %s724_s18 }
  0x36   : > { %p721_p8 = pnand %p719_p6, %p705_p7  ;;  %p727_p10 = scmp.lt.s32.totalorder %s725_s19, %s718_s15 }
  0x38   : > { %p722_p2 = pneg %p721_p8  ;;  %p728_p12 = por %p727_p10, %p726_p1 }
  0x3a   : > { %p729_p13 = pnand %p728_p12, %p722_p2 }
  0x3c   : > { %732 = shalt.err (!%p729_p13)
}
  0x3d   : > { %636 = dma.hbm_to_vmem [thread:$0]  (!%p916_p3), %s912_s20, 64, %s920_s22, %s195_s24  }
  0x3e   : > { %p1066_p4 = scmp.lt.s32.totalorder %s801_s28, 11  ;;  %p1067_p5 = scmp.ge.s32.totalorder %s801_s28, 1 }
  0x40   : > { %p211_p7 = pnand %p1067_p5, %p1066_p4 }
  0x41   : > { %s954_s21 = sand.u32 (!%p211_p7), 1, %s793_s0  }
  0x42   : > { %214 = sbr.rel (%p211_p7) target bundleno = 821 (0x335), region = 40  ;;  %s584_s25 = sshll.u32 (!%p211_p7), %s954_s21, 2 }
  0x43   : > { %s217_s30 = scalar_lea.sflag (!%p211_p7), [#allocation6], %s954_s21  ;;  %s220_s8 = scalar_lea.vmem (!%p211_p7), [#allocation5], %s584_s25 }
  0x49   : > { %780 = dma.done.wait (%p893_p11), %s217_s30, 64  }
  0x4a   : > { %782 = vsyncadd (%p893_p11), %s217_s30, 4294967232  ;;  %s585_s20 = sshll.u32 %s954_s21, 3  ;;  %p586_p1 = scmp.ne.s32.totalorder %s871_s29, 0 }
  0x4b   : > { %s963_s22 = scalar_lea.vmem [#allocation8], %s585_s20  ;;  %vm252_vm0 = vcmask (!%p586_p1), 261120   ;;  %v805_v0 = vmov (!%p586_p1), 0.0  }
  0x4c   : > { %251 = sbr.rel (%p586_p1) target bundleno = 83 (0x53), region = 48  ;;  %253 = vst.msk [vmem:[#allocation2] sm:$0xff] (!%p586_p1), %vm252_vm0, %v805_v0 }
  0x53 PF: > { %s1068_s3 = sld [smem:[#allocation15_spill]]  ;;  %v806_v2 = vmov 0.0   ;;  %s1069_s2 = sld [smem:[#allocation14_spill]]  ;;  %vm807_vm1 = vmmov 0   ;;  %v308_v5 = vld [vmem:[%s220_s8] sm:$0xf] }
  0x54   : > { %621 = vmatprep.subr.bf16.mxu1 %v806_v2  ;;  %615 = vmatprep.subr.bf16.mxu0 %v806_v2  ;;  %vm324_vm2 = vcmask 130048   ;;  %s976_s15 = sshll.u32 %s871_s29, 7  ;;  %vm294_vm3 = vcmask 1040384   ;;  %vm296_vm4 = vcmask 1041408   ;;  %vm298_vm5 = vcmask 1042432   ;;  %p1070_p2 = scmp.ne.s32.totalorder %s1062_s13, 0 }
  0x55   : > { %617 = vmatprep.mubr.msk.bf16.mxu0 %vm807_vm1, %v806_v2  ;;  %625 = vmatprep.mubr.msk.bf16.mxu1 %vm807_vm1, %v806_v2  ;;  %s255_s17 = sld [smem:[#allocation4 + %s976_s15]]  ;;  %s259_s18 = sadd.s32 1, %s976_s15  ;;  %vm300_vm6 = vcmask 1043456   ;;  %vm302_vm7 = vcmask 1044480   ;;  %vm304_vm8 = vcmask 1045504   ;;  %vm306_vm9 = vcmask 1046528  }
  0x56   : > { %s260_s19 = sld [smem:[#allocation4 + %s259_s18]]  ;;  %s264_s25 = sadd.s32 2, %s976_s15  ;;  %vm392_vm10 = vcmask 261120   ;;  %v599_v26 = vld [vmem:[%s1053_s5] ss:$0 sm:$0xff] }
  0x57   : > { %s265_s30 = sld [smem:[#allocation4 + %s264_s25]]  ;;  %s269_s20 = sadd.s32 3, %s976_s15  ;;  %v596_v32 = vld [vmem:[%s1052_s4] ss:$0 sm:$0xff] }
  0x58   : > { %s270_s8 = sld [smem:[#allocation4 + %s269_s20]]  ;;  %s274_s23 = sadd.s32 4, %s976_s15 }
  0x59   : > { %v682_v1 = vld [vmem:[%s1068_s3] sm:$0xff]   ;;  %v684_v4 = vld [vmem:[%s1068_s3 + $0x8] sm:$0xff]   ;;  %s275_s24 = sld [smem:[#allocation4 + %s274_s23]]  ;;  %s279_s12 = sadd.s32 5, %s976_s15 }
  0x5a   : > { %v683_v3 = vld [vmem:[%s1069_s2] sm:$0xff]   ;;  %622 = vmatpush3.bf16.msra.mxu1 %v682_v1  ;;  %s280_s9 = sld [smem:[#allocation4 + %s279_s12]]  ;;  %s284_s11 = sadd.s32 6, %s976_s15 }
  0x5b   : > { %623 = vmatprep.subr.bf16.mxu1 %v806_v2  ;;  %616 = vmatpush3.bf16.msra.mxu0 %v683_v3  ;;  %s588_s16 = sshll.u32 %s255_s17, 3  ;;  %s985_s1 = sld [smem:[#allocation4 + %s284_s11]] }
  0x5c   : > { %s589_s2 = sshll.u32 %s260_s19, 3  ;;  %s257_s3 = scalar_lea.vmem [#allocation2], %s588_s16 }
  0x5d   : > { %v258_v6 = vld [vmem:[%s257_s3] sm:$0xff]  ;;  %s590_s10 = sshll.u32 %s265_s30, 3  ;;  %s262_s18 = scalar_lea.vmem [#allocation2], %s589_s2 }
  0x5e   : > { %624 = vmatpush3.bf16.msra.mxu1 %v684_v4  ;;  %618 = vmatmul.mubr.msk.bf16.vlgmr.msra.gmra.mrb[0].mxu0 %vm324_vm2, %v308_v5  ;;  %v263_v7 = vld [vmem:[%s262_s18] sm:$0xff]  ;;  %s591_s25 = sshll.u32 %s270_s8, 3  ;;  %s267_s20 = scalar_lea.vmem [#allocation2], %s590_s10 }
  0x5f   : > { %v268_v8 = vld [vmem:[%s267_s20] sm:$0xff]  ;;  %s592_s23 = sshll.u32 %s275_s24, 3  ;;  %v295_v9 = vsel %vm294_vm3, %v258_v6, %v263_v7  ;;  %s272_s12 = scalar_lea.vmem [#allocation2], %s591_s25 }
  0x60   : > { %v273_v10 = vld [vmem:[%s272_s12] sm:$0xff]  ;;  %s593_s17 = sshll.u32 %s280_s9, 3  ;;  %v297_v11 = vsel %vm296_vm4, %v295_v9, %v268_v8  ;;  %s277_s19 = scalar_lea.vmem [#allocation2], %s592_s23 }
  0x61   : > { %v278_v12 = vld [vmem:[%s277_s19] sm:$0xff]  ;;  %s594_s3 = sshll.u32 %s985_s1, 3  ;;  %v299_v13 = vsel %vm298_vm5, %v297_v11, %v273_v10  ;;  %s289_s30 = sadd.s32 7, %s976_s15 }
  0x62   : > { %s282_s11 = scalar_lea.vmem [#allocation2], %s593_s17  ;;  %s290_s2 = sld [smem:[#allocation4 + %s289_s30]]  ;;  %v301_v15 = vsel %vm300_vm6, %v299_v13, %v278_v12 }
  0x63   : > { %v283_v14 = vld [vmem:[%s282_s11] sm:$0xff]  ;;  %s287_s8 = scalar_lea.vmem [#allocation2], %s594_s3  ;;  %s808_s16 = smov 64  }
  0x64   : > { %v288_v16 = vld [vmem:[%s287_s8] sm:$0xff]  ;;  %v303_v17 = vsel %vm302_vm7, %v301_v15, %v283_v14  ;;  %s809_s20 = smov 96   ;;  %s810_s23 = smov 32  }
  0x65   : > { %v305_v18 = vsel %vm304_vm8, %v303_v17, %v288_v16  ;;  %s604_s12 = sshll.u32 %s871_s29, 3  ;;  %s489_s17 = sshll.u32 %s963_s22, 4  ;;  %s1004_s17 = int_to_ptr.vmem [resolvable:$true] %s489_s17 }
  0x66   : > { %s1002_s30 = scalar_lea.hbm %s1054_s6, %s976_s15  ;;  %s544_s11 = scalar_lea.vmem [#allocation2], %s604_s12 }
  0x67   : > { %s733_s8 = scalar_lea.vmem %s1004_s17, 128  ;;  %s811_s29 = smov [#allocation8]  }
  0x68   : > { %s595_s10 = sshll.u32 %s290_s2, 3  ;;  %s476_s2 = scalar_lea.sflag [#allocation7], %s954_s21 }
  0x69   : > { %s292_s24 = scalar_lea.vmem [#allocation2], %s595_s10  ;;  %p734_p11 = scmp.ne.s32.totalorder %s1004_s17, %s733_s8 }
  0x6a   : > { %v293_v19 = vld [vmem:[%s292_s24] sm:$0xff]  ;;  %s737_s15 = sshll.u32 %s811_s29, 4  ;;  %s738_s15 = int_to_ptr.vmem [resolvable:$false] %s737_s15 }
  0x6b   : > { %v307_v20 = vsel %vm306_vm9, %v305_v18, %v293_v19  ;;  %p735_p3 = pnand %p734_p11, %p1070_p2  ;;  %s739_s10 = scalar_lea.vmem %s738_s15, 256 }
  0x6c   : > { %v368_v21 = vpack.c.bf16 %v307_v20, %v307_v20  ;;  %p740_p0 = scmp.lt.s32.totalorder %s1004_s17, %s738_s15  ;;  %p741_p6 = scmp.lt.s32.totalorder %s739_s10, %s733_s8 }
  0x6d   : > { %p736_p9 = pneg %p735_p3 }
  0x6e   : > { %626 = vmatmul.mubr.msk.bf16.vlgmr.msra.gmra.mrb[0].mxu1 %vm392_vm10, %v368_v21  ;;  %p742_p8 = por %p741_p6, %p740_p0 }
  0x70   : > { %p743_p10 = pnand %p742_p8, %p736_p9 }
 0x131   : > { %v362_v22 = vpop.f32.mrb[0].mxu0 }
 0x132   : > { %v619_v23 = vpop.f32.mrb[1].mxu0  ;;  %v363_v33 = vadd.f32 %v596_v32, %v362_v22 }
 0x133   : > { %v365_v24 = vpop.f32.mrb[2].mxu0 }
 0x134   : > { %v620_v25 = vpop.f32.mrb[3].mxu0 }
 0x141   : > { %v430_v27 = vpop.f32.mrb[0].mxu1 }
 0x142   : > { %v431_v28 = vadd.f32 %v599_v26, %v430_v27  ;;  %v627_v29 = vpop.f32.mrb[1].mxu1 }
 0x143   : > { %v433_v30 = vpop.f32.mrb[2].mxu1 }
 0x144   : > { %444 = vrot.lane.b32.xlu0 %v431_v28, %s808_s16  ;;  %v628_v31 = vpop.f32.mrb[3].mxu1  ;;  %v436_v34 = vadd.f32 %v431_v28, %v363_v33 }
 0x146   : > { %v603_v35 = vmul.f32 -1.442695, %v436_v34 }
 0x148   : > { %685 = vpow2.f32 %v603_v35 }
 0x152   : > { %v686_v36 = vpop.eup %685 }
 0x153   : > { %v440_v37 = vadd.f32 1.0, %v686_v36 }
 0x155   : > { %687 = vrcp.f32 %v440_v37 }
 0x15f   : > { %v688_v38 = vpop.eup %687 }
 0x160   : > { %v454_v45 = vsub.f32 1.0, %v688_v38 }
 0x1b6   : > { %v445_v39 = vpop.permute.xlu0 %444 }
 0x1b7   : > { %v447_v40 = vmul.f32 %v688_v38, %v445_v39 }
 0x1b9   : > { %449 = vrot.lane.b32.xlu0 %v447_v40, %s808_s16 }
 0x22b   : > { %v450_v41 = vpop.permute.xlu0 %449 }
 0x22c   : > { %v452_v42 = vadd.f32 %v450_v41, %v363_v33 }
 0x22e   : > { %689 = vtanh.f32 %v452_v42 }
 0x238   : > { %v690_v43 = vpop.eup %689 }
 0x239   : > { %456 = vrot.lane.b32.xlu1 %v690_v43, %s809_s20 }
 0x23d   : > { %461 = vrot.lane.b32.xlu1 %v307_v20, %s810_s23 }
 0x2ab   : > { %v457_v44 = vpop.permute.xlu1 %456 }
 0x2ac   : > { %v459_v47 = vmul.f32 %v457_v44, %v454_v45 }
 0x2af   : > { %v462_v46 = vpop.permute.xlu1 %461 }
 0x2b0   : > { %v464_v48 = vmul.f32 %v688_v38, %v462_v46 }
 0x2b2   : > { %v465_v49 = vadd.f32 %v464_v48, %v459_v47 }
 0x2b4   : > { %467 = vrot.lane.b32.xlu0 %v465_v49, %s809_s20 }
 0x326   : > { %v468_v50 = vpop.permute.xlu0 %467 }
 0x327   : > { %470 = vst.msk [vmem:[%s963_s22] sm:$0xff] %vm392_vm10, %v468_v50  ;;  %605 = vst.msk [vmem:[%s544_s11 + $0x8] sm:$0xff] %vm392_vm10, %v468_v50 }
 0x328   : > { %746 = shalt.err (!%p743_p10)
}
 0x329   : > { %s747_s21 = scalar_lea.hbm %s1002_s30, 128  ;;  %s751_s1 = scalar_lea.hbm %s1054_s6, 1280 }
 0x32a   : > { %p748_p12 = scmp.ne.s32.totalorder %s1002_s30, %s747_s21  ;;  %p752_p5 = scmp.lt.u32.totalorder %s1002_s30, %s1054_s6 }
 0x32b   : > { %p753_p7 = scmp.lt.u32.totalorder %s751_s1, %s747_s21  ;;  %p755_p11 = scmp.lt.u32.totalorder %s747_s21, %s1002_s30 }
 0x32c   : > { %p749_p13 = pnand %p748_p12, %p1070_p2 }
 0x32d   : > { %p754_p1 = por %p753_p7, %p752_p5 }
 0x32e   : > { %p750_p4 = pneg %p749_p13 }
 0x32f   : > { %p756_p3 = por %p755_p11, %p754_p1 }
 0x331   : > { %p757_p9 = pnand %p756_p3, %p750_p4 }
 0x333   : > { %760 = shalt.err (!%p757_p9)
}
 0x334   : > { %631 = dma.vmem_to_hbm [thread:$0]  (%p1070_p2), %s1004_s17, 128, %s1002_s30, %s476_s2  }
 0x335 PF: > { %p642_p0 = scmp.ge.s32.totalorder %s801_s28, 2  ;;  %s501_s18 = sand.u32 1, %s789_s26  }
 0x336   : > { %p1071_p6 = scmp.ne.s32.totalorder %s1063_s14, 0  ;;  %s502_s25 = scalar_lea.sflag [#allocation7], %s501_s18 }
 0x338   : > { %p638_p8 = pnand %p642_p0, %p1071_p6 }
 0x33a   : > { %784 = dma.done.wait (!%p638_p8), %s502_s25, 128  }
 0x33b   : > { %786 = vsyncadd (!%p638_p8), %s502_s25, 4294967168  ;;  %s1072_s20 = sld [smem:[#allocation12_spill]]  ;;  %p25_p10 = scmp.ge.s32.totalorder %s875_s7, 12  }
 0x33c   : > { %s1073_s26 = smov %s793_s0  ;;  %s1074_s0 = smov %s797_s27 }
 0x33d   : > { %s1076_s28 = smov %s875_s7  ;;  %27 = sbr.rel (!%p25_p10) target bundleno = 21 (0x15), region = 98 }
 0x341   : > { %s1075_s27 = smov %s1072_s20 }
 0x344   :  { %507 = vsyncpa [#allocation6], 1 }
 0x345   :  { %509 = vsyncpa [#allocation6 + $0x1], 1 }
 0x346   :  { %510 = vsyncpa [#allocation7], 1 }
 0x347   :  { %512 = vsyncpa [#allocation7 + $0x1], 1 }

</bundles_post_ra>
